<compile_context>
chip_gen: v7x
topology: tpu7x:2x2x1
jax: 0.10.0
libtpu: 0.0.40
codegen_flags: <defaults>
</compile_context>

<pallas_src>
import jax
import jax.numpy as jnp
from jax.experimental import pallas as pl
from jax.experimental.pallas import tpu as pltpu


LANE = 128        # vreg lane width (last-dim alignment for lane-dense stores)
SUBLANE = 8       # f32 vreg sublane height (second-to-last-dim alignment)
MAX_TILE_B = 512  # batch tile cap; keeps double-buffered tiles + resident
                  # weights comfortably under v7x's 32 MiB default scoped VMEM


def _round_up(n, m):
    return ((n + m - 1) // m) * m


def _pad2d(a, rows, cols):
    r, c = a.shape
    return jnp.pad(a, ((0, rows - r), (0, cols - c)))


# ----------------------------- Pallas kernel --------------------------------

def _fused_mlp_kernel(x_ref, y_ref, w1_ref, b1_ref, w2_ref, b2_ref, o_ref):
    # Fused: relu((x + y) @ W1 + b1) @ W2 + b2.  Hidden activation stays in
    # vregs/VMEM.  MXU sees bf16 operands with f32 accumulation; the
    # elementwise epilogue (bias, ReLU) stays in f32 (safe on v5e's VPU).
    z = (x_ref[...] + y_ref[...]).astype(jnp.bfloat16)                 # VPU add (f32) -> bf16
    h = jnp.dot(z, w1_ref[...], preferred_element_type=jnp.float32)    # MXU (bf16 in, f32 acc)
    h = jnp.maximum(h + b1_ref[...], 0.0)                              # bias + ReLU, f32 (VPU)
    acc = jnp.dot(h.astype(jnp.bfloat16), w2_ref[...],
                  preferred_element_type=jnp.float32)                  # MXU (bf16 in, f32 acc)
    o_ref[...] = (acc + b2_ref[...]).astype(o_ref.dtype)               # lane-dense (128) store


# ------------------------------ Layer wrapper --------------------------------

class FusedTwoInputMLP:
    """Two-input fused MLP layer: relu((x + y) @ W1 + b1) @ W2 + b2.

    * Contraction dims (d_in, hid) are kept at their natural sizes (no dead
      MXU work); only the output feature dim is lane-padded to 128 so the
      kernel's store is unmasked.
    * Weights live in bf16 (MXU-native on all TPU generations); biases stay
      f32.  Zero-padding of W2/b2 output columns is numerically inert and the
      padded columns are cropped at the model boundary.
    * Returns the lane-dense padded (batch_padded, op) slab; the caller crops
      rows >= B (nonzero garbage when batch is padded) and cols >= d_out.
    """

    def __init__(self, w1, b1, w2, b2):
        d_in, hid = w1.shape
        hid2, d_out = w2.shape
        assert hid == hid2 and b1.shape == (1, hid) and b2.shape == (1, d_out)
        self.d_in, self.hid, self.d_out = d_in, hid, d_out
        self.op = _round_up(d_out, LANE)                 # lane-padded output dim only
        self.w1 = w1.astype(jnp.bfloat16)                # natural (d_in, hid)
        self.b1 = b1.astype(jnp.float32)
        self.w2 = _pad2d(w2, hid, self.op).astype(jnp.bfloat16)
        self.b2 = _pad2d(b2, 1, self.op).astype(jnp.float32)

    def __call__(self, x, y):
        B, D = x.shape
        assert D == self.d_in and y.shape == (B, D)

        tile_b = min(MAX_TILE_B, _round_up(B, SUBLANE))
        bp = _round_up(B, tile_b)
        if bp != B:
            # Only when B is not already a tile multiple (amortized at scale).
            # Padded rows come out as relu(b1)@W2 + b2 (NOT zero) and must be
            # cropped by the caller.
            x = jnp.pad(x, ((0, bp - B), (0, 0)))
            y = jnp.pad(y, ((0, bp - B), (0, 0)))
        grid = (bp // tile_b,)

        # VMEM budget: double-buffered x/y/out tiles + resident weights/biases.
        f32b, bf16b = 4, 2
        budget = (2 * 2 * tile_b * self.d_in * f32b          # x, y tiles (double-buffered)
                  + 2 * tile_b * self.op * f32b              # out tile (double-buffered)
                  + 2 * (self.w1.size + self.w2.size) * bf16b
                  + 2 * (self.b1.size + self.b2.size) * f32b)
        vmem_limit = int(min(64 << 20, max(4 << 20, 2 * budget)))

        batch_idx = lambda i: (i, 0)
        resident = lambda i: (0, 0)   # weights/biases: DMA'd once, stay resident

        out_p = pl.pallas_call(
            _fused_mlp_kernel,
            out_shape=jax.ShapeDtypeStruct((bp, self.op), x.dtype),
            grid=grid,
            in_specs=[
                pl.BlockSpec((tile_b, self.d_in), batch_idx),   # x (unpadded features)
                pl.BlockSpec((tile_b, self.d_in), batch_idx),   # y (unpadded features)
                pl.BlockSpec((self.d_in, self.hid), resident),  # W1 (bf16)
                pl.BlockSpec((1, self.hid), resident),          # b1 (f32)
                pl.BlockSpec((self.hid, self.op), resident),    # W2 (bf16, out-dim padded)
                pl.BlockSpec((1, self.op), resident),           # b2 (f32, out-dim padded)
            ],
            out_specs=pl.BlockSpec((tile_b, self.op), batch_idx),
            compiler_params=pltpu.CompilerParams(
                dimension_semantics=("parallel",),   # shard batch tiles across v7x's 2 TCs
                vmem_limit_bytes=vmem_limit),
        )(x, y, self.w1, self.b1, self.w2, self.b2)

        # Return the lane-dense padded slab; crop happens once at the model
        # boundary so a downstream consumer could ingest the slab directly.
        return out_p


class Sequential:
    """JAX/Pallas port of ocl.utils.Sequential: supports multi-input layers."""

    def __init__(self, *layers):
        self.layers = list(layers)

    def __call__(self, *inputs):
        outputs = inputs
        for layer in self.layers:
            if isinstance(outputs, (tuple, list)):
                outputs = layer(*outputs)
            else:
                outputs = layer(outputs)
        return outputs


# ----------------------------------- main -----------------------------------

if __name__ == "__main__":
    key = jax.random.PRNGKey(0)
    kx, ky, kw1, kb1, kw2, kb2 = jax.random.split(key, 6)

    B, D_IN, HID, D_OUT = 8, 32, 64, 32

    x = jax.random.normal(kx, (B, D_IN), dtype=jnp.float32)
    y = jax.random.normal(ky, (B, D_IN), dtype=jnp.float32)

    # Deterministic synthetic parameters (Sequential is a container; the
    # concrete layer stack is instantiated here, not loaded from a checkpoint).
    w1 = jax.random.normal(kw1, (D_IN, HID), dtype=jnp.float32) * 0.1
    b1 = jax.random.normal(kb1, (1, HID), dtype=jnp.float32) * 0.1
    w2 = jax.random.normal(kw2, (HID, D_OUT), dtype=jnp.float32) * 0.1
    b2 = jax.random.normal(kb2, (1, D_OUT), dtype=jnp.float32) * 0.1

    # Sequential exercises the multi-input threading of the original module
    # (first layer takes two inputs); the hot path is one fused Pallas kernel.
    model = Sequential(FusedTwoInputMLP(w1, b1, w2, b2))

    # Single jitted dispatch; the crop to (B, D_OUT) happens once at the
    # model boundary (the layer returns the lane-dense padded slab).
    @jax.jit
    def forward(a, b):
        return model(a, b)[:B, :D_OUT]

    out = jax.block_until_ready(forward(x, y))
    assert out.shape == (B, D_OUT)

    # Reference that mirrors the kernel's bf16-operand / f32-accumulate matmuls.
    w1_bf, w2_bf = w1.astype(jnp.bfloat16), w2.astype(jnp.bfloat16)
    h_ref = jnp.maximum(
        jnp.dot((x + y).astype(jnp.bfloat16), w1_bf,
                preferred_element_type=jnp.float32) + b1, 0.0)
    ref_bf = jnp.dot(h_ref.astype(jnp.bfloat16), w2_bf,
                     preferred_element_type=jnp.float32) + b2
    assert jnp.allclose(out, ref_bf, atol=2e-3, rtol=2e-3), \
        "mismatch vs bf16-matched reference"

    # Loose sanity check vs pure-f32 math (difference is bf16 operand rounding).
    ref_f32 = jnp.maximum((x + y) @ w1 + b1, 0.0) @ w2 + b2
    assert jnp.allclose(out, ref_f32, atol=5e-2, rtol=5e-2), \
        "mismatch vs f32 reference"

    print("KERNEL_OK")
</pallas_src>

<mosaic_0001>
module attributes {stable_mosaic.version = 11 : i64} {
  func.func @_fused_mlp_kernel(%arg0: i32, %arg1: memref<8x32xf32, #tpu.memory_space<vmem>>, %arg2: memref<8x32xf32, #tpu.memory_space<vmem>>, %arg3: memref<32x64xbf16, #tpu.memory_space<vmem>>, %arg4: memref<1x64xf32, #tpu.memory_space<vmem>>, %arg5: memref<64x128xbf16, #tpu.memory_space<vmem>>, %arg6: memref<1x128xf32, #tpu.memory_space<vmem>>, %arg7: memref<8x128xf32, #tpu.memory_space<vmem>>) attributes {dimension_semantics = [#tpu.dimension_semantics<parallel>], iteration_bounds = array<i64: 1>, scalar_prefetch = 0 : i64, scratch_operands = 0 : i64, tpu.core_type = #tpu.core_type<tc>, window_params = [{transform_indices = @transform_0, window_bounds = array<i64: 8, 32>}, {transform_indices = @transform_1, window_bounds = array<i64: 8, 32>}, {pipeline_mode = #tpu.pipeline_mode<synchronous>, transform_indices = @transform_2, window_bounds = array<i64: 32, 64>}, {pipeline_mode = #tpu.pipeline_mode<synchronous>, transform_indices = @transform_3, window_bounds = array<i64: 1, 64>}, {pipeline_mode = #tpu.pipeline_mode<synchronous>, transform_indices = @transform_4, window_bounds = array<i64: 64, 128>}, {pipeline_mode = #tpu.pipeline_mode<synchronous>, transform_indices = @transform_5, window_bounds = array<i64: 1, 128>}, {transform_indices = @transform_6, window_bounds = array<i64: 8, 128>}]} {
    %c0 = arith.constant 0 : index
    %c0_0 = arith.constant 0 : index
    %0 = vector.load %arg1[%c0, %c0_0] : memref<8x32xf32, #tpu.memory_space<vmem>>, vector<8x32xf32>
    %c0_1 = arith.constant 0 : index
    %c0_2 = arith.constant 0 : index
    %1 = vector.load %arg2[%c0_1, %c0_2] : memref<8x32xf32, #tpu.memory_space<vmem>>, vector<8x32xf32>
    %2 = arith.addf %0, %1 : vector<8x32xf32>
    %3 = arith.truncf %2 : vector<8x32xf32> to vector<8x32xbf16>
    %c0_3 = arith.constant 0 : index
    %c0_4 = arith.constant 0 : index
    %4 = vector.load %arg3[%c0_3, %c0_4] : memref<32x64xbf16, #tpu.memory_space<vmem>>, vector<32x64xbf16>
    %cst = arith.constant dense<0.000000e+00> : vector<8x64xf32>
    %5 = tpu.matmul %3, %4, %cst {dimension_numbers = #tpu.dot_dimension_numbers<[1], [0], [0], [1], [0, 0, 1, 1], [], []>} : vector<8x32xbf16>, vector<32x64xbf16>, vector<8x64xf32> -> vector<8x64xf32>
    %c0_5 = arith.constant 0 : index
    %c0_6 = arith.constant 0 : index
    %6 = vector.load %arg4[%c0_5, %c0_6] : memref<1x64xf32, #tpu.memory_space<vmem>>, vector<1x64xf32>
    %7 = vector.broadcast %6 : vector<1x64xf32> to vector<8x64xf32>
    %8 = arith.addf %5, %7 : vector<8x64xf32>
    %cst_7 = arith.constant 0.000000e+00 : f32
    %9 = vector.broadcast %cst_7 : f32 to vector<8x64xf32>
    %10 = arith.maximumf %8, %9 : vector<8x64xf32>
    %11 = arith.truncf %10 : vector<8x64xf32> to vector<8x64xbf16>
    %c0_8 = arith.constant 0 : index
    %c0_9 = arith.constant 0 : index
    %12 = vector.load %arg5[%c0_8, %c0_9] : memref<64x128xbf16, #tpu.memory_space<vmem>>, vector<64x128xbf16>
    %cst_10 = arith.constant dense<0.000000e+00> : vector<8x128xf32>
    %13 = tpu.matmul %11, %12, %cst_10 {dimension_numbers = #tpu.dot_dimension_numbers<[1], [0], [0], [1], [0, 0, 1, 1], [], []>} : vector<8x64xbf16>, vector<64x128xbf16>, vector<8x128xf32> -> vector<8x128xf32>
    %c0_11 = arith.constant 0 : index
    %c0_12 = arith.constant 0 : index
    %14 = vector.load %arg6[%c0_11, %c0_12] : memref<1x128xf32, #tpu.memory_space<vmem>>, vector<1x128xf32>
    %15 = vector.broadcast %14 : vector<1x128xf32> to vector<8x128xf32>
    %16 = arith.addf %13, %15 : vector<8x128xf32>
    %c0_13 = arith.constant 0 : index
    %c0_14 = arith.constant 0 : index
    %17 = vector.load %arg7[%c0_13, %c0_14] : memref<8x128xf32, #tpu.memory_space<vmem>>, vector<8x128xf32>
    tpu.vector_store %arg7[%c0_13, %c0_14], %16 {strides = array<i32>} : memref<8x128xf32, #tpu.memory_space<vmem>>, vector<8x128xf32>,
    return
  }
  func.func @transform_0(%arg0: i32) -> (i32, i32) {
    %c0_i32 = arith.constant 0 : i32
    %c0_i32_0 = arith.constant 0 : i32
    return %arg0, %c0_i32 : i32, i32
  }
  func.func @transform_1(%arg0: i32) -> (i32, i32) {
    %c0_i32 = arith.constant 0 : i32
    %c0_i32_0 = arith.constant 0 : i32
    return %arg0, %c0_i32 : i32, i32
  }
  func.func @transform_2(%arg0: i32) -> (i32, i32) {
    %c0_i32 = arith.constant 0 : i32
    %c0_i32_0 = arith.constant 0 : i32
    %c0_i32_1 = arith.constant 0 : i32
    return %c0_i32, %c0_i32_0 : i32, i32
  }
  func.func @transform_3(%arg0: i32) -> (i32, i32) {
    %c0_i32 = arith.constant 0 : i32
    %c0_i32_0 = arith.constant 0 : i32
    %c0_i32_1 = arith.constant 0 : i32
    return %c0_i32, %c0_i32_0 : i32, i32
  }
  func.func @transform_4(%arg0: i32) -> (i32, i32) {
    %c0_i32 = arith.constant 0 : i32
    %c0_i32_0 = arith.constant 0 : i32
    %c0_i32_1 = arith.constant 0 : i32
    return %c0_i32, %c0_i32_0 : i32, i32
  }
  func.func @transform_5(%arg0: i32) -> (i32, i32) {
    %c0_i32 = arith.constant 0 : i32
    %c0_i32_0 = arith.constant 0 : i32
    %c0_i32_1 = arith.constant 0 : i32
    return %c0_i32, %c0_i32_0 : i32, i32
  }
  func.func @transform_6(%arg0: i32) -> (i32, i32) {
    %c0_i32 = arith.constant 0 : i32
    %c0_i32_0 = arith.constant 0 : i32
    return %arg0, %c0_i32 : i32, i32
  }
}

</mosaic_0001>

<bundles_post_ra>
// kernel: forward.1
= control target key start
LH: loop header
LB: loop body
LE: loop exit
PB: predicated region body
PF: predicated region fallthrough
CT: control target
= control target key end

     0   :  { %11 = vsyncpa [#allocation3], 0  ;;  %s484_s0 = inlined_call_operand.hbm [shape: f32[8,32], index: 0, kind: input, shape index: {}]   ;;  %s485_s1 = inlined_call_operand.hbm [shape: f32[8,32], index: 1, kind: input, shape index: {}]   ;;  %s486_s2 = inlined_call_operand.vmem [shape: bf16[32,64], index: 2, kind: input, shape index: {}]   ;;  %s487_s3 = inlined_call_operand.vmem [shape: f32[1,64], index: 3, kind: input, shape index: {}]   ;;  %s488_s4 = inlined_call_operand.hbm [shape: bf16[64,128], index: 4, kind: input, shape index: {}]   ;;  %s489_s5 = inlined_call_operand.vmem [shape: f32[1,128], index: 5, kind: input, shape index: {}]   ;;  %s490_s6 = inlined_call_operand.hbm [shape: f32[8,128], index: 6, kind: output, shape index: {}]  }
   0x1   :  { %12 = vsyncpa [#allocation6], 0 }
   0x2   :  { %13 = vsyncpa [#allocation4], 0  ;;  %s381_s21 = smov [#allocation5]   ;;  %s382_s23 = smov [#allocation2]  }
   0x3   :  { %s30_s22 = sshll.u32 %s381_s21, 4  ;;  %s20_s24 = sshll.u32 %s382_s23, 4  ;;  %s31_s22 = int_to_ptr.vmem [resolvable:$true] %s30_s22  ;;  %s21_s24 = int_to_ptr.vmem [resolvable:$true] %s20_s24 }
   0x4   :  { %s287_s27 = scalar_lea.hbm %s485_s1, 128 }
   0x5   :  { %p288_p0 = scmp.ne.s32.totalorder %s485_s1, %s287_s27  ;;  %p291_p1 = scmp.lt.u32.totalorder %s287_s27, %s485_s1 }
   0x7   :  { %p293_p2 = pnand %p291_p1, %p288_p0 }
   0x9   :  { %296 = shalt.err (!%p293_p2)
}
   0xa   :  { %s297_s8 = scalar_lea.vmem %s31_s22, 128  ;;  %p302_p4 = scmp.lt.s32.totalorder %s31_s22, %s31_s22 }
   0xb   :  { %p298_p3 = scmp.ne.s32.totalorder %s31_s22, %s297_s8  ;;  %p303_p5 = scmp.lt.s32.totalorder %s297_s8, %s297_s8 }
   0xd   :  { %p304_p6 = por %p303_p5, %p302_p4 }
   0xf   :  { %p305_p7 = pnand %p304_p6, %p298_p3 }
  0x11   :  { %308 = shalt.err (!%p305_p7)
}
  0x12   :  { %33 = dma.hbm_to_vmem [thread:$0]  %s485_s1, 128, %s31_s22, [#allocation6]  }
  0x13   :  { %s309_s13 = scalar_lea.hbm %s484_s0, 128 }
  0x14   :  { %p310_p8 = scmp.ne.s32.totalorder %s484_s0, %s309_s13  ;;  %p313_p9 = scmp.lt.u32.totalorder %s309_s13, %s484_s0 }
  0x16   :  { %p315_p10 = pnand %p313_p9, %p310_p8 }
  0x18   :  { %318 = shalt.err (!%p315_p10)
}
  0x19   :  { %s319_s18 = scalar_lea.vmem %s21_s24, 128  ;;  %p324_p12 = scmp.lt.s32.totalorder %s21_s24, %s21_s24 }
  0x1a   :  { %p320_p11 = scmp.ne.s32.totalorder %s21_s24, %s319_s18  ;;  %p325_p13 = scmp.lt.s32.totalorder %s319_s18, %s319_s18 }
  0x1c   :  { %p326_p0 = por %p325_p13, %p324_p12 }
  0x1e   :  { %p327_p1 = pnand %p326_p0, %p320_p11 }
  0x20   :  { %330 = shalt.err (!%p327_p1)
}
  0x21   :  { %23 = dma.hbm_to_vmem [thread:$0]  %s484_s0, 128, %s21_s24, [#allocation3]  }
  0x22   :  { %s383_s20 = smov [#allocation7]   ;;  %s331_s25 = scalar_lea.hbm %s488_s4, 512 }
  0x23   :  { %s43_s21 = sshll.u32 %s383_s20, 4  ;;  %p332_p2 = scmp.ne.s32.totalorder %s488_s4, %s331_s25  ;;  %s44_s21 = int_to_ptr.vmem [resolvable:$true] %s43_s21 }
  0x24   :  { %p335_p3 = scmp.lt.u32.totalorder %s331_s25, %s488_s4 }
  0x26   :  { %p337_p4 = pnand %p335_p3, %p332_p2 }
  0x28   :  { %340 = shalt.err (!%p337_p4)
}
  0x29   :  { %s341_s30 = scalar_lea.vmem %s44_s21, 512  ;;  %p346_p6 = scmp.lt.s32.totalorder %s44_s21, %s44_s21 }
  0x2a   :  { %p342_p5 = scmp.ne.s32.totalorder %s44_s21, %s341_s30  ;;  %p347_p7 = scmp.lt.s32.totalorder %s341_s30, %s341_s30 }
  0x2c   :  { %p348_p8 = por %p347_p7, %p346_p6 }
  0x2e   :  { %p349_p9 = pnand %p348_p8, %p342_p5 }
  0x30   :  { %352 = shalt.err (!%p349_p9)
}
  0x31   :  { %s384_s0 = smov 64   ;;  %s385_s24 = smov 4  }
  0x32   :  { %49 = dma.hbm_to_vmem [thread:$0]  %s488_s4, 512, %s44_s21, [#allocation6], %s384_s0, %s384_s0, %s385_s24  }
  0x33   :  { %375 = dma.done.wait [#allocation3], 128  }
  0x34   :  { %376 = vsyncadd [#allocation3], 4294967168 }
  0x35   :  { %377 = dma.done.wait [#allocation6], 640  }
  0x36   :  { %378 = vsyncadd [#allocation6], 4294966656  ;;  %v386_v0 = vmov 0.0   ;;  %vm387_vm0 = vmmov 0   ;;  %v281_v1 = vld [vmem:[%s486_s2] sm:$0xff]   ;;  %v282_v2 = vld [vmem:[%s486_s2 + $0x8] sm:$0xff]  }
  0x37   :  { %253 = vmatprep.subr.bf16.mxu0 %v386_v0  ;;  %257 = vmatprep.mubr.msk.bf16.mxu0 %vm387_vm0, %v386_v0  ;;  %v62_v3 = vld [vmem:[#allocation2] sm:$0xff]  ;;  %v63_v4 = vld [vmem:[#allocation5] sm:$0xff]  ;;  %v283_v6 = vld [vmem:[#allocation7] sm:$0xff]   ;;  %vm89_vm1 = vcmask 261120   ;;  %vm174_vm2 = vcmask 523264   ;;  %s388_s15 = smov [#allocation8]  }
  0x38   :  { %261 = vmatprep.subr.bf16.mxu1 %v386_v0  ;;  %269 = vmatprep.mubr.msk.bf16.mxu1 %vm387_vm0, %v386_v0  ;;  %v64_v5 = vadd.f32 %v63_v4, %v62_v3  ;;  %v284_v7 = vld [vmem:[#allocation7 + $0x8] sm:$0xff]   ;;  %v285_v9 = vld [vmem:[#allocation7 + $0x10] sm:$0xff]   ;;  %v286_v10 = vld [vmem:[#allocation7 + $0x18] sm:$0xff]   ;;  %s225_s16 = sshll.u32 %s388_s15, 4  ;;  %s226_s16 = int_to_ptr.vmem [resolvable:$true] %s225_s16 }
  0x39   :  { %254 = vmatpush3.bf16.msra.mxu0 %v281_v1  ;;  %262 = vmatpush3.bf16.msra.mxu1 %v283_v6  ;;  %v235_v11 = vld [vmem:[%s487_s3] ss:$0 sm:$0xff]  ;;  %s353_s3 = scalar_lea.vmem %s226_s16, 128  ;;  %p358_p11 = scmp.lt.s32.totalorder %s226_s16, %s226_s16 }
  0x3a   :  { %255 = vmatprep.subr.bf16.mxu0 %v386_v0  ;;  %v65_v8 = vpack.c.bf16 %v64_v5, %v64_v5  ;;  %263 = vmatprep.subr.bf16.mxu1 %v386_v0  ;;  %v239_v19 = vld [vmem:[%s489_s5] ss:$0 sm:$0xff]  ;;  %p354_p10 = scmp.ne.s32.totalorder %s226_s16, %s353_s3  ;;  %p359_p12 = scmp.lt.s32.totalorder %s353_s3, %s353_s3 }
  0x3c   :  { %p360_p13 = por %p359_p12, %p358_p11 }
  0x3d   :  { %256 = vmatpush3.bf16.msra.mxu0 %v282_v2  ;;  %264 = vmatpush3.bf16.msra.mxu1 %v284_v7 }
  0x3e   :  { %265 = vmatprep.subr.bf16.mxu1 %v386_v0  ;;  %p361_p0 = pnand %p360_p13, %p354_p10 }
  0x40   :  { %258 = vmatmul.mubr.msk.bf16.vlgmr.msra.gmra.mrb[0].mxu0 %vm89_vm1, %v65_v8 }
  0x41   :  { %266 = vmatpush3.bf16.msra.mxu1 %v285_v9 }
  0x42   :  { %267 = vmatprep.subr.bf16.mxu1 %v386_v0 }
  0x45   :  { %268 = vmatpush3.bf16.msra.mxu1 %v286_v10 }
 0x113   :  { %v127_v12 = vpop.f32.mrb[0].mxu0 }
 0x114   :  { %v128_v13 = vadd.f32 %v235_v11, %v127_v12  ;;  %v259_v14 = vpop.f32.mrb[1].mxu0 }
 0x115   :  { %v130_v15 = vpop.f32.mrb[2].mxu0 }
 0x116   :  { %v133_v16 = vmax.f32 %v128_v13, 0.0  ;;  %v260_v17 = vpop.f32.mrb[3].mxu0 }
 0x118   :  { %v134_v18 = vpack.c.bf16 %v133_v16, %v133_v16 }
 0x11a   :  { %270 = vmatmul.mubr.msk.bf16.vlgmr.msra.gmra.mrb[0].mxu1 %vm174_vm2, %v134_v18 }
 0x1ed   :  { %v212_v20 = vpop.f32.mrb[0].mxu1 }
 0x1ee   :  { %v213_v21 = vadd.f32 %v239_v19, %v212_v20  ;;  %v271_v22 = vpop.f32.mrb[1].mxu1 }
 0x1ef   :  { %v215_v23 = vpop.f32.mrb[2].mxu1 }
 0x1f0   :  { %218 = vst [vmem:[#allocation8] sm:$0xff] %v213_v21  ;;  %v272_v24 = vpop.f32.mrb[3].mxu1 }
 0x1f1   :  { %364 = shalt.err (!%p361_p0)
}
 0x1f2   :  { %s365_s5 = scalar_lea.hbm %s490_s6, 128 }
 0x1f3   :  { %p366_p1 = scmp.ne.s32.totalorder %s490_s6, %s365_s5  ;;  %p369_p2 = scmp.lt.u32.totalorder %s365_s5, %s490_s6 }
 0x1f5   :  { %p371_p3 = pnand %p369_p2, %p366_p1 }
 0x1f7   :  { %374 = shalt.err (!%p371_p3)
}
 0x1f8   :  { %228 = dma.vmem_to_hbm [thread:$0]  %s226_s16, 128, %s490_s6, [#allocation4]  }
 0x1f9   :  { %379 = dma.done.wait [#allocation4], 128  }
 0x1fa   :  { %380 = vsyncadd [#allocation4], 4294967168 }
 0x1fb   :  { %232 = vsyncpa [#allocation3], 1 }
 0x1fc   :  { %233 = vsyncpa [#allocation6], 1 }
 0x1fd   :  { %234 = vsyncpa [#allocation4], 1 }

</bundles_post_ra>
